<compile_context>
chip_gen: v7x
topology: tpu7x:2x2x1
jax: 0.10.0
libtpu: 0.0.40
codegen_flags: <defaults>
</compile_context>

<pallas_src>
import jax
import jax.numpy as jnp
from jax.experimental import pallas as pl
from jax.experimental.pallas import tpu as pltpu


def _relu_kernel(x_ref, o_ref):
    # Pure VPU elementwise max-with-0 on the current VMEM tile.
    o_ref[...] = jnp.maximum(x_ref[...], 0)


def _relu_2d(x2d: jax.Array, tile_rows: int) -> jax.Array:
    """Run the ReLU kernel over a lane-dense (rows, width) slab."""
    rows, width = x2d.shape
    # Full-dim block is always legal even if rows % 8 != 0; otherwise tile_rows
    # is already sublane-aligned so stores stay unmasked.
    block_rows = min(tile_rows, rows)
    grid = (pl.cdiv(rows, block_rows),)
    return pl.pallas_call(
        _relu_kernel,
        out_shape=jax.ShapeDtypeStruct((rows, width), x2d.dtype),
        grid=grid,
        in_specs=[pl.BlockSpec((block_rows, width), lambda i: (i, 0))],
        out_specs=pl.BlockSpec((block_rows, width), lambda i: (i, 0)),
        # In-place: output reuses the input HBM buffer (ReLU(inplace=True)).
        input_output_aliases={0: 0},
        compiler_params=pltpu.CompilerParams(
            dimension_semantics=("parallel",),
        ),
    )(x2d)


def relu_pallas(x: jax.Array, *, target_tile_bytes: int = 2 * 1024 * 1024) -> jax.Array:
    """Elementwise ReLU over an arbitrary-shaped array (HBM-bandwidth bound)."""
    orig_shape = x.shape
    dtype = x.dtype
    n = x.size
    itemsize = jnp.dtype(dtype).itemsize
    # Sublane alignment so row tiles map to whole vregs: 8 rows for 32-bit,
    # 16 for bf16/f16, 32 for int8/fp8.
    row_align = 8 * max(1, 4 // itemsize)

    # Pick a lane-dense width (multiple of 128) that divides n exactly so the
    # reshape is free and no pad / slice copies are emitted.
    width = None
    for w in (1024, 512, 256, 128):
        if n % w == 0:
            width = w
            break

    x_flat = x.reshape(-1)
    if width is None:
        # Ragged element count: pad only up to the next multiple of 1024
        # elements (<= 1023 extra), not to a full tile.
        width = 1024
        n_pad = pl.cdiv(n, width) * width
        x_flat = jnp.pad(x_flat, (0, n_pad - n))
    rows = x_flat.size // width
    x2d = x_flat.reshape(rows, width)

    # ~target_tile_bytes per input tile; with double-buffered in + out this is
    # ~4x that in VMEM, comfortably under the scoped default on v5e/v6e/v7x.
    tile_rows = (target_tile_bytes // (width * itemsize)) // row_align * row_align
    tile_rows = max(row_align, tile_rows)

    out2d = _relu_2d(x2d, tile_rows)

    out_flat = out2d.reshape(-1)
    if out_flat.size != n:  # only on the ragged fallback path
        out_flat = out_flat[:n]
    return out_flat.reshape(orig_shape)


class MPallas:
    """JAX/Pallas equivalent of the PyTorch module M (just ReLU(inplace=True))."""

    def __init__(self):
        # Donating the argument lets the in-place alias take effect with no copy.
        self._fn = jax.jit(relu_pallas, donate_argnums=(0,))

    def __call__(self, x432):
        return self._fn(x432)


if __name__ == "__main__":
    key = jax.random.PRNGKey(0)
    # Small NCHW input consistent with the module's forward
    # (original was [1, 7392, 7, 7]).
    x = jax.random.normal(key, (2, 4, 16, 16), dtype=jnp.float32)

    # Reference computed before the (donating) kernel call consumes x.
    ref = jax.block_until_ready(jnp.maximum(x, 0.0))

    model = MPallas()
    y = model(x)
    y = jax.block_until_ready(y)

    assert y.shape == ref.shape and y.dtype == ref.dtype
    assert bool(jnp.allclose(y, ref)), "Pallas ReLU mismatch vs reference"

    print("KERNEL_OK")
</pallas_src>

<mosaic_0001>
module attributes {stable_mosaic.version = 11 : i64} {
  func.func @_relu_kernel(%arg0: i32, %arg1: memref<2x1024xf32, #tpu.memory_space<vmem>>, %arg2: memref<2x1024xf32, #tpu.memory_space<vmem>>) attributes {dimension_semantics = [#tpu.dimension_semantics<parallel>], iteration_bounds = array<i64: 1>, scalar_prefetch = 0 : i64, scratch_operands = 0 : i64, tpu.core_type = #tpu.core_type<tc>, window_params = [{transform_indices = @transform_0, window_bounds = array<i64: 2, 1024>}, {transform_indices = @transform_1, window_bounds = array<i64: 2, 1024>}]} {
    %c0 = arith.constant 0 : index
    %c0_0 = arith.constant 0 : index
    %0 = vector.load %arg1[%c0, %c0_0] : memref<2x1024xf32, #tpu.memory_space<vmem>>, vector<2x1024xf32>
    %cst = arith.constant 0.000000e+00 : f32
    %1 = vector.broadcast %cst : f32 to vector<2x1024xf32>
    %2 = arith.maximumf %0, %1 : vector<2x1024xf32>
    %c0_1 = arith.constant 0 : index
    %c0_2 = arith.constant 0 : index
    %3 = vector.load %arg2[%c0_1, %c0_2] : memref<2x1024xf32, #tpu.memory_space<vmem>>, vector<2x1024xf32>
    tpu.vector_store %arg2[%c0_1, %c0_2], %2 {strides = array<i32>} : memref<2x1024xf32, #tpu.memory_space<vmem>>, vector<2x1024xf32>,
    return
  }
  func.func @transform_0(%arg0: i32) -> (i32, i32) {
    %c0_i32 = arith.constant 0 : i32
    %c0_i32_0 = arith.constant 0 : i32
    return %arg0, %c0_i32 : i32, i32
  }
  func.func @transform_1(%arg0: i32) -> (i32, i32) {
    %c0_i32 = arith.constant 0 : i32
    %c0_i32_0 = arith.constant 0 : i32
    return %arg0, %c0_i32 : i32, i32
  }
}

</mosaic_0001>

<bundles_post_ra>
// kernel: relu_pallas.1
= control target key start
LH: loop header
LB: loop body
LE: loop exit
PB: predicated region body
PF: predicated region fallthrough
CT: control target
= control target key end

     0   :  { %s40_s0 = inlined_call_operand.vmem [shape: f32[2,1024], index: 0, kind: input, shape index: {}, may-alias: {0,1}]   ;;  %s41_s1 = inlined_call_operand.vmem [shape: f32[2,1024], index: 1, kind: output, shape index: {}, may-alias: {0,1}]  }
   0x1   :  { %v8_v0 = vld [vmem:[%s40_s0] sm:$0xff]  ;;  %v9_v1 = vld [vmem:[%s40_s0 + $0x8] sm:$0xff] }
   0x2   :  { %v10_v2 = vmax.f32 %v8_v0, 0.0  ;;  %v11_v3 = vmax.f32 %v9_v1, 0.0 }
   0x4   :  { %12 = vst [vmem:[%s41_s1] sm:$0xff] %v10_v2  ;;  %13 = vst [vmem:[%s41_s1 + $0x8] sm:$0xff] %v11_v3 }

</bundles_post_ra>
